<compile_context>
chip_gen: v7x
topology: tpu7x:2x2x1
jax: 0.10.0
libtpu: 0.0.40
codegen_flags: <defaults>
</compile_context>

<pallas_src>
import jax
import jax.numpy as jnp
from jax import lax
from jax.experimental import pallas as pl
from jax.experimental.pallas import tpu as pltpu


def _per_class_grad_norm_kernel(x_ref, wt_ref, b_ref, bmat_ref, bnorm2_ref,
                                std_ref, mean_ref, out_ref):
    x = x_ref[...]            # (TN, D) f32 batch tile
    wt = wt_ref[...]          # (K, D)  W^T, resident
    bmat = bmat_ref[...]      # (K, D)  W^T * std   (hoisted to wrapper)
    bnorm2 = bnorm2_ref[...]  # (K, 1)  ||W^T*std||^2 per class (hoisted)
    std = std_ref[...]        # (1, D)
    mean = mean_ref[...]      # (1, D)

    # ---- forward: logits = x @ W + b (contract D against W^T; no transpose) ----
    logits = lax.dot_general(
        x, wt, (((1,), (1,)), ((), ())),
        preferred_element_type=jnp.float32) + b_ref[...]             # (TN, K)

    # ---- stable softmax; divide goes to the EUP via approximate reciprocal ----
    m = jnp.max(logits, axis=-1, keepdims=True)
    e = jnp.exp(logits - m)
    p = e * pl.reciprocal(jnp.sum(e, axis=-1, keepdims=True), approx=True)  # (TN, K)

    # ---- shared backward piece, computed ONCE for all K classes ----
    # d(sum CE_c)/dx = (p - onehot_c) @ W^T  =>  g_c*std + mean = a - bmat[c]
    pwt = jnp.dot(p, wt, preferred_element_type=jnp.float32)         # (TN, D)
    a = pwt * std + mean                                             # (TN, D)

    # ---- norm expansion: ||a - bmat[c]||^2 = ||a||^2 - 2<bmat[c],a> + ||bmat[c]||^2 ----
    aa = a * a                                                       # (TN, D)
    ones_row = jnp.ones((1, a.shape[1]), dtype=jnp.float32)
    # ||a||^2 per sample, produced directly lane-oriented as (1, TN) via a
    # tiny 1-row MXU matmul (no in-kernel transpose / XLU relayout).
    a_norm2_row = lax.dot_general(
        ones_row, aa, (((1,), (1,)), ((), ())),
        preferred_element_type=jnp.float32)                          # (1, TN)
    # Cross term computed directly in (K, TN) orientation on the MXU.
    cross = lax.dot_general(
        bmat, a, (((1,), (1,)), ((), ())),
        preferred_element_type=jnp.float32)                          # (K, TN)

    sq = bnorm2 + a_norm2_row - 2.0 * cross                          # (K, TN)
    # Clamp the radicand: guards against catastrophic cancellation / tiny
    # negative values before sqrt.
    out_ref[...] = jnp.sqrt(jnp.maximum(sq, 0.0))                    # lane-dense store


def _tile_and_vmem_config(n, d, k):
    """Pick batch-tile size and VMEM limit per TPU generation."""
    kind = jax.devices()[0].device_kind.lower()
    if ("v5" in kind) or ("v6" in kind):
        # 128 MiB physical VMEM; big tiles amortize per-step overhead and push
        # the x stream toward the HBM roofline.
        target_tile, vmem_cap = 512, 100 * 1024 * 1024
    else:
        # v7x (and unknown): 64 MiB VMEM per TensorCore -> smaller tiles and a
        # conservative cap that leaves double-buffer headroom.
        target_tile, vmem_cap = 256, 48 * 1024 * 1024

    def est_bytes(tn):
        # x double-buffer + pwt/a/aa intermediates + resident (double-buffered)
        # W^T, bmat, std, mean + small (K, tn) slabs (logits/p/cross/out).
        return 4 * (2 * tn * d + 3 * tn * d + 4 * k * d + 4 * d + 8 * k * tn)

    tile_n = n if n <= target_tile else target_tile
    while tile_n > 128 and est_bytes(tile_n) > vmem_cap:
        tile_n //= 2
    # TODO(synk): for very large D (e.g. ImageNet-scale flatten on v7x) add a
    # reduction grid axis over D instead of holding full-D tiles.

    vmem_limit = None
    if est_bytes(tile_n) > 24 * 1024 * 1024:
        vmem_limit = int(min(vmem_cap, max(2 * est_bytes(tile_n), 32 * 1024 * 1024)))
    return tile_n, vmem_limit


def per_class_grad_norms(x_nchw, W, b, data_mean, data_std, num_classes):
    """Returns grad norms of shape (num_classes, N), one row per target class."""
    N, C, H, Wd = x_nchw.shape
    D = C * H * Wd
    K = num_classes

    # Same memory order as tensor.view(N, -1) on an NCHW tensor; no padded copy.
    x_flat = x_nchw.reshape(N, D).astype(jnp.float32)

    wt = W.T.astype(jnp.float32)                                     # (K, D) precomputed transpose
    b2 = b.reshape(1, K).astype(jnp.float32)
    std_flat = jnp.repeat(jnp.asarray(data_std, jnp.float32), H * Wd).reshape(1, D)
    mean_flat = jnp.repeat(jnp.asarray(data_mean, jnp.float32), H * Wd).reshape(1, D)
    # Batch-independent per-class terms, hoisted out of the kernel (computed once).
    bmat = wt * std_flat                                             # (K, D)
    bnorm2 = jnp.sum(bmat * bmat, axis=1, keepdims=True)             # (K, 1)

    tile_n, vmem_limit = _tile_and_vmem_config(N, D, K)
    grid = (pl.cdiv(N, tile_n),)

    cp_kwargs = dict(
        # Each batch tile writes distinct output columns -> shardable across
        # v7x's 2 TensorCores; neutral on v5e/v6e.
        dimension_semantics=("parallel",),
    )
    if vmem_limit is not None:
        cp_kwargs["vmem_limit_bytes"] = vmem_limit

    out = pl.pallas_call(
        _per_class_grad_norm_kernel,
        out_shape=jax.ShapeDtypeStruct((K, N), jnp.float32),
        grid=grid,
        in_specs=[
            pl.BlockSpec((tile_n, D), lambda i: (i, 0)),   # x tile over batch
            pl.BlockSpec((K, D), lambda i: (0, 0)),        # W^T, resident
            pl.BlockSpec((1, K), lambda i: (0, 0)),        # bias, resident
            pl.BlockSpec((K, D), lambda i: (0, 0)),        # W^T * std, resident
            pl.BlockSpec((K, 1), lambda i: (0, 0)),        # ||W^T*std||^2, resident
            pl.BlockSpec((1, D), lambda i: (0, 0)),        # std  (flattened per-element)
            pl.BlockSpec((1, D), lambda i: (0, 0)),        # mean (flattened per-element)
        ],
        out_specs=pl.BlockSpec((K, tile_n), lambda i: (0, i)),
        compiler_params=pltpu.CompilerParams(**cp_kwargs),
    )(x_flat, wt, b2, bmat, bnorm2, std_flat, mean_flat)
    return out


if __name__ == "__main__":
    # Small shapes consistent with the module's forward
    N, C, H, Wd = 8, 4, 16, 16
    num_classes = 10
    D = C * H * Wd

    key = jax.random.PRNGKey(0)
    kx, kw, kb = jax.random.split(key, 3)
    x = jax.random.normal(kx, (N, C, H, Wd), dtype=jnp.float32)       # NCHW
    # Deterministic synthetic "model": linear classifier on flattened input.
    W = jax.random.normal(kw, (D, num_classes), dtype=jnp.float32) * 0.05
    b = jax.random.normal(kb, (num_classes,), dtype=jnp.float32) * 0.1

    data_mean = jnp.array([0.40, 0.45, 0.50, 0.55], dtype=jnp.float32)
    data_std = jnp.array([0.20, 0.25, 0.30, 0.35], dtype=jnp.float32)

    norms = per_class_grad_norms(x, W, b, data_mean, data_std, num_classes)
    norms = jax.block_until_ready(norms)                              # (K, N)

    # Outputs of the module's forward:
    lower_bound = jnp.max(norms)                                      # max grad norm
    all_grad_norms = norms.reshape(-1)                                # concat, class-major

    # ---- reference via jax autodiff (matches loss.backward() on inputs) ----
    def ce_sum_loss(x_flat, Wm, bm, class_idx):
        logits = x_flat @ Wm + bm
        logp = jax.nn.log_softmax(logits, axis=-1)
        return -jnp.sum(logp[:, class_idx])

    x_flat = x.reshape(N, D)
    std_flat_ref = jnp.repeat(data_std, H * Wd)
    mean_flat_ref = jnp.repeat(data_mean, H * Wd)
    ref_rows = []
    for c in range(num_classes):
        g = jax.grad(ce_sum_loss)(x_flat, W, b, c)                    # (N, D)
        gu = g * std_flat_ref[None, :] + mean_flat_ref[None, :]
        ref_rows.append(jnp.sqrt(jnp.sum(gu * gu, axis=-1)))
    ref = jnp.stack(ref_rows)                                         # (K, N)

    assert jnp.allclose(norms, ref, rtol=1e-3, atol=1e-4), (
        f"mismatch: max abs err {jnp.max(jnp.abs(norms - ref))}")
    assert lower_bound.shape == () and all_grad_norms.shape == (num_classes * N,)

    # TODO(synk): the AutoAttack adversary search (APGD/FAB/Square), dataset
    # sampling, and domain-mask accuracy tallying are host-side / external-lib
    # control flow with no Pallas equivalent and are not implemented here.
    print("KERNEL_OK")
</pallas_src>

<mosaic_0001>
module attributes {stable_mosaic.version = 11 : i64} {
  func.func @_per_class_grad_norm_kernel(%arg0: i32, %arg1: memref<8x1024xf32, #tpu.memory_space<vmem>>, %arg2: memref<10x1024xf32, #tpu.memory_space<vmem>>, %arg3: memref<1x10xf32, #tpu.memory_space<vmem>>, %arg4: memref<10x1024xf32, #tpu.memory_space<vmem>>, %arg5: memref<10x1xf32, #tpu.memory_space<vmem>>, %arg6: memref<1x1024xf32, #tpu.memory_space<vmem>>, %arg7: memref<1x1024xf32, #tpu.memory_space<vmem>>, %arg8: memref<10x8xf32, #tpu.memory_space<vmem>>) attributes {dimension_semantics = [#tpu.dimension_semantics<parallel>], iteration_bounds = array<i64: 1>, scalar_prefetch = 0 : i64, scratch_operands = 0 : i64, tpu.core_type = #tpu.core_type<tc>, window_params = [{transform_indices = @transform_0, window_bounds = array<i64: 8, 1024>}, {pipeline_mode = #tpu.pipeline_mode<synchronous>, transform_indices = @transform_1, window_bounds = array<i64: 10, 1024>}, {pipeline_mode = #tpu.pipeline_mode<synchronous>, transform_indices = @transform_2, window_bounds = array<i64: 1, 10>}, {pipeline_mode = #tpu.pipeline_mode<synchronous>, transform_indices = @transform_3, window_bounds = array<i64: 10, 1024>}, {pipeline_mode = #tpu.pipeline_mode<synchronous>, transform_indices = @transform_4, window_bounds = array<i64: 10, 1>}, {pipeline_mode = #tpu.pipeline_mode<synchronous>, transform_indices = @transform_5, window_bounds = array<i64: 1, 1024>}, {pipeline_mode = #tpu.pipeline_mode<synchronous>, transform_indices = @transform_6, window_bounds = array<i64: 1, 1024>}, {transform_indices = @transform_7, window_bounds = array<i64: 10, 8>}]} {
    %c0 = arith.constant 0 : index
    %c0_0 = arith.constant 0 : index
    %0 = vector.load %arg1[%c0, %c0_0] : memref<8x1024xf32, #tpu.memory_space<vmem>>, vector<8x1024xf32>
    %c0_1 = arith.constant 0 : index
    %c0_2 = arith.constant 0 : index
    %1 = vector.load %arg2[%c0_1, %c0_2] : memref<10x1024xf32, #tpu.memory_space<vmem>>, vector<10x1024xf32>
    %c0_3 = arith.constant 0 : index
    %c0_4 = arith.constant 0 : index
    %2 = vector.load %arg4[%c0_3, %c0_4] : memref<10x1024xf32, #tpu.memory_space<vmem>>, vector<10x1024xf32>
    %c0_5 = arith.constant 0 : index
    %c0_6 = arith.constant 0 : index
    %3 = vector.load %arg5[%c0_5, %c0_6] : memref<10x1xf32, #tpu.memory_space<vmem>>, vector<10x1xf32>
    %c0_7 = arith.constant 0 : index
    %c0_8 = arith.constant 0 : index
    %4 = vector.load %arg6[%c0_7, %c0_8] : memref<1x1024xf32, #tpu.memory_space<vmem>>, vector<1x1024xf32>
    %c0_9 = arith.constant 0 : index
    %c0_10 = arith.constant 0 : index
    %5 = vector.load %arg7[%c0_9, %c0_10] : memref<1x1024xf32, #tpu.memory_space<vmem>>, vector<1x1024xf32>
    %cst = arith.constant dense<0.000000e+00> : vector<8x10xf32>
    %6 = tpu.matmul %0, %1, %cst {dimension_numbers = #tpu.dot_dimension_numbers<[1], [1], [0], [0], [0, 0, 1, 0], [], []>} : vector<8x1024xf32>, vector<10x1024xf32>, vector<8x10xf32> -> vector<8x10xf32>
    %c0_11 = arith.constant 0 : index
    %c0_12 = arith.constant 0 : index
    %7 = vector.load %arg3[%c0_11, %c0_12] : memref<1x10xf32, #tpu.memory_space<vmem>>, vector<1x10xf32>
    %8 = vector.broadcast %7 : vector<1x10xf32> to vector<8x10xf32>
    %9 = arith.addf %6, %8 : vector<8x10xf32>
    %cst_13 = arith.constant dense<0xFF800000> : vector<8xf32>
    %10 = vector.multi_reduction <maximumf>, %9, %cst_13 [1] : vector<8x10xf32> to vector<8xf32>
    %11 = vector.shape_cast %10 : vector<8xf32> to vector<8x1xf32>
    %12 = vector.broadcast %11 : vector<8x1xf32> to vector<8x10xf32>
    %13 = arith.subf %9, %12 : vector<8x10xf32>
    %14 = math.exp %13 : vector<8x10xf32>
    %cst_14 = arith.constant dense<0.000000e+00> : vector<8xf32>
    %15 = vector.multi_reduction <add>, %14, %cst_14 [1] : vector<8x10xf32> to vector<8xf32>
    %16 = vector.shape_cast %15 : vector<8xf32> to vector<8x1xf32>
    %17 = tpu.reciprocal %16 {approx = true} : vector<8x1xf32> -> vector<8x1xf32>
    %18 = vector.broadcast %17 : vector<8x1xf32> to vector<8x10xf32>
    %19 = arith.mulf %14, %18 : vector<8x10xf32>
    %cst_15 = arith.constant dense<0.000000e+00> : vector<8x1024xf32>
    %20 = tpu.matmul %19, %1, %cst_15 {dimension_numbers = #tpu.dot_dimension_numbers<[1], [0], [0], [1], [0, 0, 1, 1], [], []>} : vector<8x10xf32>, vector<10x1024xf32>, vector<8x1024xf32> -> vector<8x1024xf32>
    %21 = vector.broadcast %4 : vector<1x1024xf32> to vector<8x1024xf32>
    %22 = arith.mulf %20, %21 : vector<8x1024xf32>
    %23 = vector.broadcast %5 : vector<1x1024xf32> to vector<8x1024xf32>
    %24 = arith.addf %22, %23 : vector<8x1024xf32>
    %25 = arith.mulf %24, %24 : vector<8x1024xf32>
    %cst_16 = arith.constant 1.000000e+00 : f32
    %26 = vector.broadcast %cst_16 : f32 to vector<1x1024xf32>
    %cst_17 = arith.constant dense<0.000000e+00> : vector<1x8xf32>
    %27 = tpu.matmul %26, %25, %cst_17 {dimension_numbers = #tpu.dot_dimension_numbers<[1], [1], [0], [0], [0, 0, 1, 0], [], []>} : vector<1x1024xf32>, vector<8x1024xf32>, vector<1x8xf32> -> vector<1x8xf32>
    %cst_18 = arith.constant dense<0.000000e+00> : vector<10x8xf32>
    %28 = tpu.matmul %2, %24, %cst_18 {dimension_numbers = #tpu.dot_dimension_numbers<[1], [1], [0], [0], [0, 0, 1, 0], [], []>} : vector<10x1024xf32>, vector<8x1024xf32>, vector<10x8xf32> -> vector<10x8xf32>
    %29 = vector.broadcast %3 : vector<10x1xf32> to vector<10x8xf32>
    %30 = vector.broadcast %27 : vector<1x8xf32> to vector<10x8xf32>
    %31 = arith.addf %29, %30 : vector<10x8xf32>
    %cst_19 = arith.constant 2.000000e+00 : f32
    %32 = vector.broadcast %cst_19 : f32 to vector<10x8xf32>
    %33 = arith.mulf %32, %28 : vector<10x8xf32>
    %34 = arith.subf %31, %33 : vector<10x8xf32>
    %cst_20 = arith.constant 0.000000e+00 : f32
    %35 = vector.broadcast %cst_20 : f32 to vector<10x8xf32>
    %36 = arith.maximumf %34, %35 : vector<10x8xf32>
    %37 = math.sqrt %36 : vector<10x8xf32>
    %c0_21 = arith.constant 0 : index
    %c0_22 = arith.constant 0 : index
    %38 = vector.load %arg8[%c0_21, %c0_22] : memref<10x8xf32, #tpu.memory_space<vmem>>, vector<10x8xf32>
    tpu.vector_store %arg8[%c0_21, %c0_22], %37 {strides = array<i32>} : memref<10x8xf32, #tpu.memory_space<vmem>>, vector<10x8xf32>,
    return
  }
  func.func @transform_0(%arg0: i32) -> (i32, i32) {
    %c0_i32 = arith.constant 0 : i32
    %c0_i32_0 = arith.constant 0 : i32
    return %arg0, %c0_i32 : i32, i32
  }
  func.func @transform_1(%arg0: i32) -> (i32, i32) {
    %c0_i32 = arith.constant 0 : i32
    %c0_i32_0 = arith.constant 0 : i32
    %c0_i32_1 = arith.constant 0 : i32
    return %c0_i32, %c0_i32_0 : i32, i32
  }
  func.func @transform_2(%arg0: i32) -> (i32, i32) {
    %c0_i32 = arith.constant 0 : i32
    %c0_i32_0 = arith.constant 0 : i32
    %c0_i32_1 = arith.constant 0 : i32
    return %c0_i32, %c0_i32_0 : i32, i32
  }
  func.func @transform_3(%arg0: i32) -> (i32, i32) {
    %c0_i32 = arith.constant 0 : i32
    %c0_i32_0 = arith.constant 0 : i32
    %c0_i32_1 = arith.constant 0 : i32
    return %c0_i32, %c0_i32_0 : i32, i32
  }
  func.func @transform_4(%arg0: i32) -> (i32, i32) {
    %c0_i32 = arith.constant 0 : i32
    %c0_i32_0 = arith.constant 0 : i32
    %c0_i32_1 = arith.constant 0 : i32
    return %c0_i32, %c0_i32_0 : i32, i32
  }
  func.func @transform_5(%arg0: i32) -> (i32, i32) {
    %c0_i32 = arith.constant 0 : i32
    %c0_i32_0 = arith.constant 0 : i32
    %c0_i32_1 = arith.constant 0 : i32
    return %c0_i32, %c0_i32_0 : i32, i32
  }
  func.func @transform_6(%arg0: i32) -> (i32, i32) {
    %c0_i32 = arith.constant 0 : i32
    %c0_i32_0 = arith.constant 0 : i32
    %c0_i32_1 = arith.constant 0 : i32
    return %c0_i32, %c0_i32_0 : i32, i32
  }
  func.func @transform_7(%arg0: i32) -> (i32, i32) {
    %c0_i32 = arith.constant 0 : i32
    %c0_i32_0 = arith.constant 0 : i32
    return %c0_i32, %arg0 : i32, i32
  }
}

</mosaic_0001>

<bundles_post_ra>
// kernel: tpu_custom_call.1
= control target key start
LH: loop header
LB: loop body
LE: loop exit
PB: predicated region body
PF: predicated region fallthrough
CT: control target
= control target key end

     0   :  { %12 = vsyncpa [#allocation3], 0  ;;  %s1811_s0 = inlined_call_operand.hbm [shape: f32[8,1024], index: 0, kind: input, shape index: {}]   ;;  %s1812_s1 = inlined_call_operand.hbm [shape: f32[10,1024], index: 1, kind: input, shape index: {}]   ;;  %s1813_s2 = inlined_call_operand.vmem [shape: f32[1,10], index: 2, kind: input, shape index: {}]   ;;  %s1814_s3 = inlined_call_operand.hbm [shape: f32[10,1024], index: 3, kind: input, shape index: {}]   ;;  %s1815_s4 = inlined_call_operand.vmem [shape: f32[10,1], index: 4, kind: input, shape index: {}]   ;;  %s1816_s5 = inlined_call_operand.vmem [shape: f32[1,1024], index: 5, kind: input, shape index: {}]   ;;  %s1817_s6 = inlined_call_operand.vmem [shape: f32[1,1024], index: 6, kind: input, shape index: {}]   ;;  %s1818_s7 = inlined_call_operand.vmem [shape: f32[10,8], index: 7, kind: output, shape index: {}]  }
   0x1   :  { %13 = vsyncpa [#allocation5], 0  ;;  %s1618_s24 = smov [#allocation4]   ;;  %s1548_s28 = scalar_lea.hbm %s1812_s1, 2048 }
   0x2   :  { %s29_s25 = sshll.u32 %s1618_s24, 4  ;;  %p1549_p0 = scmp.ne.s32.totalorder %s1812_s1, %s1548_s28  ;;  %s30_s25 = int_to_ptr.vmem [resolvable:$true] %s29_s25 }
   0x3   :  { %p1552_p1 = scmp.lt.u32.totalorder %s1548_s28, %s1812_s1 }
   0x5   :  { %p1554_p2 = pnand %p1552_p1, %p1549_p0 }
   0x7   :  { %1557 = shalt.err (!%p1554_p2)
}
   0x8   :  { %s1558_s10 = scalar_lea.vmem %s30_s25, 2048  ;;  %p1563_p4 = scmp.lt.s32.totalorder %s30_s25, %s30_s25 }
   0x9   :  { %p1559_p3 = scmp.ne.s32.totalorder %s30_s25, %s1558_s10  ;;  %p1564_p5 = scmp.lt.s32.totalorder %s1558_s10, %s1558_s10 }
   0xb   :  { %p1565_p6 = por %p1564_p5, %p1563_p4 }
   0xd   :  { %p1566_p7 = pnand %p1565_p6, %p1559_p3 }
   0xf   :  { %1569 = shalt.err (!%p1566_p7)
}
  0x10   :  { %s1619_s11 = smov 1024   ;;  %s1620_s12 = smov 64  }
  0x11   :  { %35 = dma.hbm_to_vmem [thread:$0]  %s1812_s1, 2048, %s30_s25, [#allocation5], %s1619_s11, %s1619_s11, %s1620_s12  }
  0x12   :  { %s1621_s15 = smov [#allocation2]   ;;  %s1622_s17 = smov [#allocation6]  }
  0x13   :  { %s20_s16 = sshll.u32 %s1621_s15, 4  ;;  %s43_s18 = sshll.u32 %s1622_s17, 4  ;;  %s21_s16 = int_to_ptr.vmem [resolvable:$true] %s20_s16  ;;  %s44_s18 = int_to_ptr.vmem [resolvable:$true] %s43_s18 }
  0x14   :  { %s1570_s21 = scalar_lea.hbm %s1811_s0, 1024 }
  0x15   :  { %p1571_p8 = scmp.ne.s32.totalorder %s1811_s0, %s1570_s21  ;;  %p1574_p9 = scmp.lt.u32.totalorder %s1570_s21, %s1811_s0 }
  0x17   :  { %p1576_p10 = pnand %p1574_p9, %p1571_p8 }
  0x19   :  { %1579 = shalt.err (!%p1576_p10)
}
  0x1a   :  { %s1580_s1 = scalar_lea.vmem %s21_s16, 1024  ;;  %p1585_p12 = scmp.lt.s32.totalorder %s21_s16, %s21_s16 }
  0x1b   :  { %p1581_p11 = scmp.ne.s32.totalorder %s21_s16, %s1580_s1  ;;  %p1586_p13 = scmp.lt.s32.totalorder %s1580_s1, %s1580_s1 }
  0x1d   :  { %p1587_p0 = por %p1586_p13, %p1585_p12 }
  0x1f   :  { %p1588_p1 = pnand %p1587_p0, %p1581_p11 }
  0x21   :  { %1591 = shalt.err (!%p1588_p1)
}
  0x22   :  { %23 = dma.hbm_to_vmem [thread:$0]  %s1811_s0, 1024, %s21_s16, [#allocation3]  }
  0x23   :  { %s1592_s30 = scalar_lea.hbm %s1814_s3, 2048 }
  0x24   :  { %p1593_p2 = scmp.ne.s32.totalorder %s1814_s3, %s1592_s30  ;;  %p1596_p3 = scmp.lt.u32.totalorder %s1592_s30, %s1814_s3 }
  0x26   :  { %p1598_p4 = pnand %p1596_p3, %p1593_p2 }
  0x28   :  { %1601 = shalt.err (!%p1598_p4)
}
  0x29   :  { %s1602_s14 = scalar_lea.vmem %s44_s18, 2048  ;;  %p1607_p6 = scmp.lt.s32.totalorder %s44_s18, %s44_s18 }
  0x2a   :  { %p1603_p5 = scmp.ne.s32.totalorder %s44_s18, %s1602_s14  ;;  %p1608_p7 = scmp.lt.s32.totalorder %s1602_s14, %s1602_s14 }
  0x2c   :  { %p1609_p8 = por %p1608_p7, %p1607_p6 }
  0x2e   :  { %p1610_p9 = pnand %p1609_p8, %p1603_p5 }
  0x30   :  { %1613 = shalt.err (!%p1610_p9)
}
  0x31   :  { %49 = dma.hbm_to_vmem [thread:$0]  %s1814_s3, 2048, %s44_s18, [#allocation5], %s1619_s11, %s1619_s11, %s1620_s12  }
  0x32   :  { %1614 = dma.done.wait [#allocation3], 1024  }
  0x33   :  { %1615 = vsyncadd [#allocation3], 4294966272 }
  0x34   :  { %1616 = dma.done.wait [#allocation5], 4096  }
  0x35   :  { %1617 = vsyncadd [#allocation5], 4294963200  ;;  %v74_v0 = vld [vmem:[#allocation4 + $0x8] sm:$0xff]  ;;  %v73_v5 = vld [vmem:[#allocation4] sm:$0xff]  ;;  %vm396_vm0 = vcmask 80896   ;;  %vm411_vm1 = vcmask 1041408   ;;  %v721_v55 = vlaneseq }
  0x36   :  { %v82_v1 = vld [vmem:[#allocation4 + $0x48] sm:$0x3]  ;;  %v81_v6 = vld [vmem:[#allocation4 + $0x40] sm:$0x3]  ;;  %v76_v14 = vld [vmem:[#allocation4 + $0x18] sm:$0xff]  ;;  %vm1623_vm2 = vmmov 1  }
  0x37   :  { %v78_v2 = vld [vmem:[#allocation4 + $0x28] sm:$0xff]  ;;  %v1709_v3 = vpack.c.bf16 %v82_v1, %v74_v0  ;;  %v1467_v8 = vpack.c.bf16 %v81_v6, %v73_v5  ;;  %v77_v9 = vld [vmem:[#allocation4 + $0x20] sm:$0xff]  ;;  %v84_v15 = vld [vmem:[#allocation4 + $0x58] sm:$0x3]  ;;  %v1624_v46 = vmov 0.0   ;;  %v1625_v51 = vmov 1.0  }
  0x38   :  { %v86_v4 = vld [vmem:[#allocation4 + $0x68] sm:$0x3]  ;;  %v85_v10 = vld [vmem:[#allocation4 + $0x60] sm:$0x3]  ;;  %v80_v16 = vld [vmem:[#allocation4 + $0x38] sm:$0xff]  ;;  %v1469_v17 = vpack.c.bf16 %v84_v15, %v76_v14  ;;  %v1626_v53 = vmov 0  }
  0x39   :  { %v1711_v7 = vpack.c.bf16 %v86_v4, %v78_v2  ;;  %v66_v11 = vld [vmem:[#allocation2 + $0x8] sm:$0xff]  ;;  %1466 = vmatprep.subr.bf16.mxu1 %v1709_v3  ;;  %v1714_v12 = vpack.c.bf16 %v85_v10, %v77_v9  ;;  %v88_v18 = vld [vmem:[#allocation4 + $0x78] sm:$0x3]  ;;  %v75_v19 = vld [vmem:[#allocation4 + $0x10] sm:$0xff]  ;;  %1538 = vset.pattern.permute.xlu1 %v1626_v53  ;;  %v1757_v56 = vshrl.u32 %v721_v55, 7  ;;  %vm1442_vm4 = vcmask 64512  }
  0x3a   :  { %180 = vmatprep.mubr.f32.mxu1 %v66_v11  ;;  %v70_v13 = vld [vmem:[#allocation2 + $0x28] sm:$0xff]  ;;  %1468 = vmatpush1.bf16.xpose.msra.mxu1 %v1467_v8  ;;  %v83_v20 = vld [vmem:[#allocation4 + $0x50] sm:$0x3]  ;;  %v1477_v21 = vpack.c.bf16 %v88_v18, %v80_v16  ;;  %v65_v24 = vld [vmem:[#allocation2] sm:$0xff]  ;;  %vm1444_vm6 = vcmask 58368  }
  0x3b   :  { %1474 = vmatprep.subr.bf16.mxu0 %v1711_v7  ;;  %320 = vmatprep.mubr.f32.mxu0 %v70_v13  ;;  %v79_v22 = vld [vmem:[#allocation4 + $0x30] sm:$0xff]  ;;  %v1471_v25 = vpack.c.bf16 %v83_v20, %v75_v19  ;;  %v69_v26 = vld [vmem:[#allocation2 + $0x20] sm:$0xff]  ;;  %v68_v28 = vld [vmem:[#allocation2 + $0x18] sm:$0xff]  ;;  %v1760_v57 = vsub.s32 0, %v1757_v56  ;;  %v727_v59 = vsub.s32 1, %v1757_v56  ;;  %v731_v62 = vsub.s32 2, %v1757_v56 }
  0x3c   :  { %1476 = vmatpush1.bf16.xpose.msra.mxu0 %v1714_v12  ;;  %v87_v23 = vld [vmem:[#allocation4 + $0x70] sm:$0x3]  ;;  %1470 = vmatprep.subr.bf16.mxu1 %v1469_v17  ;;  %v72_v29 = vld [vmem:[#allocation2 + $0x38] sm:$0xff]  ;;  %v1452_v32 = vld [vmem:[%s1813_s2] ss:$0 sm:$0xff]  ;;  %v735_v0 = vsub.s32 3, %v1757_v56 }
  0x3d   :  { %1478 = vmatprep.subr.bf16.mxu0 %v1477_v21  ;;  %v1479_v27 = vpack.c.bf16 %v87_v23, %v79_v22  ;;  %v67_v30 = vld [vmem:[#allocation2 + $0x10] sm:$0xff]  ;;  %vm1723_vm3 = vmpackc.low %vm411_vm1, %vm1623_vm2  ;;  %v90_v50 = vld [vmem:[#allocation6 + $0x8] sm:$0xff]  ;;  %1539 = vset.pattern.permute.xlu0 %v1626_v53  ;;  %v743_v9 = vsub.s32 5, %v1757_v56 }
  0x3e   :  { %v71_v31 = vld [vmem:[#allocation2 + $0x30] sm:$0xff]  ;;  %v105_v52 = vld [vmem:[%s1815_s4] sm:$0xff]  ;;  %v106_v54 = vld [vmem:[%s1815_s4 + $0x8] sm:$0x3] }
  0x3f   :  { %1408 = vperm.xlu1 %1538, %v105_v52   ;;  %v1765_v58 = vld [vmem:[%s1816_s5] sm:$0xff] }
  0x40   :  { %v1771_v60 = vld [vmem:[%s1817_s6] sm:$0xff]  ;;  %v724_v61 = vrot.slane %v1765_v58, %v1760_v57  ;;  %v728_v63 = vrot.slane %v1765_v58, %v727_v59  ;;  %v732_v6 = vrot.slane %v1765_v58, %v731_v62  ;;  %v744_v20 = vrot.slane %v1765_v58, %v743_v9 }
  0x41   :  { %181 = vmatmul.mubr.f32.vlgmr.msra.gmra.mrb[0].mxu1 %v65_v24  ;;  %v773_v1 = vrot.slane %v1771_v60, %v1760_v57  ;;  %v781_v11 = vrot.slane %v1771_v60, %v731_v62  ;;  %v785_v15 = vrot.slane %v1771_v60, %v735_v0  ;;  %v102_v62 = vld [vmem:[#allocation6 + $0x68] sm:$0x3] }
  0x42   :  { %1472 = vmatpush1.bf16.xpose.msra.mxu1 %v1471_v25  ;;  %250 = vmatprep.mubr.f32.mxu1 %v68_v28  ;;  %v793_v28 = vrot.slane %v1771_v60, %v743_v9 }
  0x43   :  { %321 = vmatmul.mubr.f32.vlgmr.msra.gmra.mrb[0].mxu0 %v69_v26  ;;  %1483 = vmatprep.subr.msk.bf16.mxu1 %vm1723_vm3, %v1709_v3  ;;  %v777_v3 = vrot.slane %v1771_v60, %v727_v59  ;;  %v94_v59 = vld [vmem:[#allocation6 + $0x28] sm:$0xff] }
  0x44   :  { %1480 = vmatpush1.bf16.xpose.msra.mxu0 %v1479_v27  ;;  %390 = vmatprep.mubr.f32.mxu0 %v72_v29  ;;  %v98_v29 = vld [vmem:[#allocation6 + $0x48] sm:$0x3] }
  0x45   :  { %1413 = vperm.xlu1 %1538, %v106_v54  }
  0x49   :  { %251 = vmatmul.mubr.f32.vlgmr.msra.gmra.mrb[0].mxu1 %v67_v30 }
  0x4a   :  { %1486 = vmatpush1.bf16.msk.msra.mxu1 %vm1723_vm3, %v1467_v8  ;;  %500 = vmatprep.mubr.f32.mxu1 %v1624_v46  ;;  %v736_v8 = vrot.slane %v1765_v58, %v735_v0  ;;  %v96_v0 = vld [vmem:[#allocation6 + $0x38] sm:$0xff] }
  0x4b   :  { %391 = vmatmul.mubr.f32.vlgmr.msra.gmra.mrb[0].mxu0 %v71_v31  ;;  %1489 = vmatprep.subr.msk.bf16.mxu1 %vm1723_vm3, %v1469_v17 }
  0x4c   :  { %1170 = vmatprep.mubr.f32.mxu0 %v90_v50  ;;  %v100_v50 = vld [vmem:[#allocation6 + $0x58] sm:$0x3] }
 0x11c   :  { %v252_v33 = vpop.f32.mrb[0].mxu1 }
 0x11d   :  { %v1505_v34 = vadd.f32 %v1452_v32, %v252_v33  ;;  %v254_v36 = vpop.f32.mrb[1].mxu1 }
 0x11e   :  { %v392_v35 = vpop.f32.mrb[0].mxu0 }
 0x11f   :  { %v394_v37 = vpop.f32.mrb[1].mxu0  ;;  %v1506_v38 = vadd.f32 %v1505_v34, %v392_v35 }
 0x120   :  { %v747_v37 = vsub.s32 6, %v1757_v56 }
 0x121   :  { %v397_v39 = vsel %vm396_vm0, %v1506_v38, -inf }
 0x122   :  { %398 = vmax.xlane.f32.xlu0 %v397_v39  ;;  %v797_v55 = vrot.slane %v1771_v60, %v747_v37 }
 0x1af   :  { %v399_v40 = vpop.xlane.xlu0 %398 }
 0x1b0   :  { %v400_v41 = vsub.f32 %v1506_v38, %v399_v40  ;;  %v97_v38 = vld [vmem:[#allocation6 + $0x40] sm:$0x3] }
 0x1b2   :  { %v401_v42 = vmul.f32 1.442695, %v400_v41 }
 0x1b4   :  { %1540 = vpow2.f32 %v401_v42  ;;  %v92_v42 = vld [vmem:[#allocation6 + $0x18] sm:$0xff] }
 0x1be   :  { %v1541_v43 = vpop.eup %1540 }
 0x1bf   :  { %v403_v44 = vsel %vm396_vm0, %v1541_v43, 0.0 }
 0x1c0   :  { %404 = vadd.xlane.f32.xlu0 %v403_v44 }
 0x24d   :  { %v405_v47 = vpop.xlane.xlu0 %404 }
 0x24e   :  { %1542 = vrcp.f32 %v405_v47  ;;  %v748_v47 = vrot.slane %v1765_v58, %v747_v37 }
 0x258   :  { %v1543_v48 = vpop.eup %1542 }
 0x259   :  { %v407_v49 = vmul.f32 %v1543_v48, %v1541_v43  ;;  %v91_v48 = vld [vmem:[#allocation6 + $0x10] sm:$0xff] }
 0x25b   :  { %1455 = vmatmul.mubr.msk.f32.vlgmr.msra.gmra.mrb[2].mxu1 %vm396_vm0, %v407_v49 }
 0x25c   :  { %1492 = vmatpush1.bf16.msk.msra.mxu1 %vm1723_vm3, %v1471_v25  ;;  %571 = vmatprep.mubr.f32.mxu1 %v1624_v46  ;;  %v89_v25 = vld [vmem:[#allocation6] sm:$0xff] }
 0x25d   :  { %1495 = vmatprep.subr.msk.bf16.mxu1 %vm1723_vm3, %v1711_v7 }
 0x25f   :  { %1458 = vmatmul.mubr.msk.f32.vlgmr.msra.gmra.mrb[4].mxu1 %vm396_vm0, %v407_v49 }
 0x260   :  { %1498 = vmatpush1.bf16.msk.msra.mxu1 %vm1723_vm3, %v1714_v12  ;;  %642 = vmatprep.mubr.f32.mxu1 %v1624_v46  ;;  %v739_v12 = vsub.s32 4, %v1757_v56 }
 0x261   :  { %1501 = vmatprep.subr.msk.bf16.mxu1 %vm1723_vm3, %v1477_v21  ;;  %v751_v21 = vsub.s32 7, %v1757_v56  ;;  %v99_v56 = vld [vmem:[#allocation6 + $0x50] sm:$0x3] }
 0x262   :  { %v740_v24 = vrot.slane %v1765_v58, %v739_v12  ;;  %v789_v36 = vrot.slane %v1771_v60, %v739_v12 }
 0x263   :  { %1461 = vmatmul.mubr.msk.f32.vlgmr.msra.gmra.mrb[6].mxu1 %vm396_vm0, %v407_v49  ;;  %v752_v33 = vrot.slane %v1765_v58, %v751_v21  ;;  %v801_v41 = vrot.slane %v1771_v60, %v751_v21  ;;  %v101_v60 = vld [vmem:[#allocation6 + $0x60] sm:$0x3] }
 0x264   :  { %1504 = vmatpush1.bf16.msk.msra.mxu1 %vm1723_vm3, %v1479_v27  ;;  %713 = vmatprep.mubr.f32.mxu1 %v1624_v46 }
 0x267   :  { %1464 = vmatmul.mubr.msk.f32.vlgmr.msra.gmra.mrb[8].mxu1 %vm396_vm0, %v407_v49 }
 0x268   :  { %890 = vmatprep.mubr.f32.mxu1 %v1625_v51 }
 0x32e   :  { %v502_v2 = vpop.f32.mrb[2].mxu1 }
 0x32f   :  { %v761_v4 = vmul.f32 %v724_v61, %v502_v2  ;;  %v504_v5 = vpop.f32.mrb[3].mxu1  ;;  %v93_v61 = vld [vmem:[#allocation6 + $0x20] sm:$0xff]  ;;  %v104_v2 = vld [vmem:[#allocation6 + $0x78] sm:$0x3] }
 0x330   :  { %v762_v7 = vmul.f32 %v728_v63, %v504_v5 }
 0x331   :  { %v810_v10 = vadd.f32 %v773_v1, %v761_v4  ;;  %v95_v1 = vld [vmem:[#allocation6 + $0x30] sm:$0xff]  ;;  %v1409_v4 = vpop.permute.xlu1 %1408 }
 0x332   :  { %v811_v13 = vadd.f32 %v777_v3, %v762_v7  ;;  %v573_v14 = vpop.f32.mrb[4].mxu1  ;;  %v103_v3 = vld [vmem:[#allocation6 + $0x70] sm:$0x3] }
 0x333   :  { %v763_v16 = vmul.f32 %v732_v6, %v573_v14  ;;  %v575_v17 = vpop.f32.mrb[5].mxu1  ;;  %v818_v22 = vmul.f32 %v810_v10, %v810_v10 }
 0x334   :  { %v764_v18 = vmul.f32 %v736_v8, %v575_v17  ;;  %1106 = vmatprep.subr.mxu0 %v811_v13  ;;  %v819_v19 = vmul.f32 %v811_v13, %v811_v13 }
 0x335   :  { %v812_v23 = vadd.f32 %v781_v11, %v763_v16  ;;  %1107 = vmatpush1.xpose.msra.mxu0 %v810_v10  ;;  %v1414_v10 = vpop.permute.xlu1 %1413 }
 0x336   :  { %v813_v26 = vadd.f32 %v785_v15, %v764_v18  ;;  %v644_v27 = vpop.f32.mrb[6].mxu1  ;;  %826 = vmatprep.subr.mxu1 %v819_v19 }
 0x337   :  { %v646_v30 = vpop.f32.mrb[7].mxu1  ;;  %827 = vmatpush1.xpose.msra.mxu1 %v818_v22  ;;  %v820_v34 = vmul.f32 %v812_v23, %v812_v23  ;;  %v765_v35 = vmul.f32 %v740_v24, %v644_v27 }
 0x338   :  { %v766_v31 = vmul.f32 %v744_v20, %v646_v30  ;;  %1171 = vmatmul.mubr.f32.vlgmr.msra.gmra.mrb[2].mxu0 %v89_v25  ;;  %1181 = vmatprep.subr.mxu0 %v813_v26  ;;  %v821_v32 = vmul.f32 %v813_v26, %v813_v26 }
 0x339   :  { %1182 = vmatpush1.xpose.msra.mxu0 %v812_v23  ;;  %1175 = vmatprep.mubr.f32.mxu0 %v98_v29  ;;  %v814_v46 = vadd.f32 %v789_v36, %v765_v35 }
 0x33a   :  { %v815_v39 = vadd.f32 %v793_v28, %v766_v31  ;;  %v715_v40 = vpop.f32.mrb[8].mxu1  ;;  %891 = vmatmul.mubr.f32.vlgmr.msra.gmra.mrb[10].mxu1 %v1625_v51  ;;  %896 = vmatprep.subr.mxu1 %v821_v32 }
 0x33b   :  { %v717_v43 = vpop.f32.mrb[9].mxu1  ;;  %897 = vmatpush1.xpose.msra.mxu1 %v820_v34  ;;  %960 = vmatprep.mubr.f32.mxu1 %v1625_v51  ;;  %v822_v53 = vmul.f32 %v814_v46, %v814_v46  ;;  %v767_v54 = vmul.f32 %v748_v47, %v715_v40 }
 0x33c   :  { %v768_v44 = vmul.f32 %v752_v33, %v717_v43  ;;  %1176 = vmatmul.mubr.f32.gmra.mrb[4].mxu0 %v97_v38  ;;  %1256 = vmatprep.subr.mxu0 %v815_v39  ;;  %v823_v45 = vmul.f32 %v815_v39, %v815_v39 }
 0x33d   :  { %1245 = vmatprep.mubr.f32.mxu0 %v92_v42  ;;  %v816_v58 = vadd.f32 %v797_v55, %v767_v54 }
 0x33e   :  { %v817_v49 = vadd.f32 %v801_v41, %v768_v44  ;;  %966 = vmatprep.subr.mxu1 %v823_v45 }
 0x33f   :  { %v824_v63 = vmul.f32 %v816_v58, %v816_v58 }
 0x340   :  { %1246 = vmatmul.mubr.f32.vlgmr.msra.gmra.mrb[2].mxu0 %v91_v48  ;;  %v825_v52 = vmul.f32 %v817_v49, %v817_v49 }
 0x341   :  { %1257 = vmatpush1.xpose.msra.mxu0 %v814_v46  ;;  %1250 = vmatprep.mubr.f32.mxu0 %v100_v50 }
 0x342   :  { %1331 = vmatprep.subr.mxu0 %v817_v49  ;;  %961 = vmatmul.mubr.f32.vlgmr.msra.gmra.mrb[10].mxu1 %v1625_v51 }
 0x343   :  { %967 = vmatpush1.xpose.msra.mxu1 %v822_v53  ;;  %1030 = vmatprep.mubr.f32.mxu1 %v1625_v51 }
 0x344   :  { %1036 = vmatprep.subr.mxu1 %v825_v52  ;;  %1251 = vmatmul.mubr.f32.gmra.mrb[4].mxu0 %v99_v56 }
 0x345   :  { %1320 = vmatprep.mubr.f32.mxu0 %v94_v59 }
 0x348   :  { %1321 = vmatmul.mubr.f32.vlgmr.msra.gmra.mrb[2].mxu0 %v93_v61 }
 0x349   :  { %1332 = vmatpush1.xpose.msra.mxu0 %v816_v58  ;;  %1325 = vmatprep.mubr.f32.mxu0 %v102_v62 }
 0x34a   :  { %1031 = vmatmul.mubr.f32.vlgmr.msra.gmra.mrb[10].mxu1 %v1625_v51 }
 0x34b   :  { %1037 = vmatpush1.xpose.msra.mxu1 %v824_v63  ;;  %1100 = vmatprep.mubr.f32.mxu1 %v1625_v51 }
 0x34c   :  { %1326 = vmatmul.mubr.f32.gmra.mrb[4].mxu0 %v101_v60 }
 0x34d   :  { %1395 = vmatprep.mubr.f32.mxu0 %v96_v0 }
 0x350   :  { %1396 = vmatmul.mubr.f32.vlgmr.msra.gmra.mrb[2].mxu0 %v95_v1 }
 0x351   :  { %1400 = vmatprep.mubr.f32.mxu0 %v104_v2 }
 0x352   :  { %1101 = vmatmul.mubr.f32.vlgmr.msra.gmra.mrb[10].mxu1 %v1625_v51 }
 0x354   :  { %1401 = vmatmul.mubr.f32.gmra.mrb[4].mxu0 %v103_v3 }
 0x423   :  { %v1397_v5 = vpop.f32.mrb[2].mxu0 }
 0x424   :  { %v1399_v6 = vpop.f32.mrb[3].mxu0  ;;  %v1422_v12 = vmul.f32 2.0, %v1397_v5 }
 0x425   :  { %v1102_v7 = vpop.f32.mrb[10].mxu1 }
 0x426   :  { %v1419_v8 = vrot.slane %v1102_v7, %v1760_v57  ;;  %v1104_v9 = vpop.f32.mrb[11].mxu1 }
 0x427   :  { %v1402_v11 = vpop.f32.mrb[4].mxu0 }
 0x428   :  { %v1420_v13 = vadd.f32 %v1419_v8, %v1409_v4  ;;  %v1421_v14 = vadd.f32 %v1419_v8, %v1414_v10  ;;  %v1423_v15 = vmul.f32 2.0, %v1402_v11  ;;  %v1404_v16 = vpop.f32.mrb[5].mxu0 }
 0x42a   :  { %v1424_v17 = vsub.f32 %v1420_v13, %v1422_v12  ;;  %v1425_v18 = vsub.f32 %v1421_v14, %v1423_v15 }
 0x42c   :  { %v1426_v19 = vmax.f32 %v1424_v17, 0.0  ;;  %v1427_v20 = vmax.f32 %v1425_v18, 0.0 }
 0x42e   :  { %1544 = vrsqrt.f32 %v1426_v19  ;;  %vm1430_vm5 = vcmp.eq.f32.partialorder %v1426_v19, inf  ;;  %v1433_v57 = vand.u32 2147483648, %v1426_v19  ;;  %vm1432_vm7 = vcmp.eq.f32.partialorder %v1426_v19, 0.0 }
 0x42f   :  { %1546 = vrsqrt.f32 %v1427_v20  ;;  %vm1437_vm8 = vcmp.eq.f32.partialorder %v1427_v20, inf  ;;  %v1440_v25 = vand.u32 2147483648, %v1427_v20  ;;  %vm1439_vm9 = vcmp.eq.f32.partialorder %v1427_v20, 0.0 }
 0x438   :  { %v1545_v51 = vpop.eup %1544 }
 0x439   :  { %v1547_v21 = vpop.eup %1546  ;;  %v1429_v22 = vmul.f32 %v1545_v51, %v1426_v19 }
 0x43a   :  { %v1436_v23 = vmul.f32 %v1547_v21, %v1427_v20 }
 0x43b   :  { %v1431_v24 = vsel %vm1430_vm5, %v1426_v19, %v1429_v22 }
 0x43c   :  { %v1434_v26 = vsel %vm1432_vm7, %v1433_v57, %v1431_v24  ;;  %v1438_v27 = vsel %vm1437_vm8, %v1427_v20, %v1436_v23 }
 0x43d   :  { %1443 = vst.msk [vmem:[%s1818_s7] sm:$0xff] %vm1442_vm4, %v1434_v26  ;;  %v1441_v28 = vsel %vm1439_vm9, %v1440_v25, %v1438_v27 }
 0x43e   :  { %1445 = vst.msk [vmem:[%s1818_s7 + $0x8] sm:$0x3] %vm1444_vm6, %v1441_v28 }
 0x43f   :  { %1450 = vsyncpa [#allocation3], 1 }
 0x440   :  { %1451 = vsyncpa [#allocation5], 1 }

</bundles_post_ra>
